<compile_context>
chip_gen: v7x
topology: tpu7x:2x2x1
jax: 0.10.0
libtpu: 0.0.40
codegen_flags: <defaults>
</compile_context>

<pallas_src>
import jax
import jax.numpy as jnp
from jax import lax
from jax.experimental import pallas as pl
from jax.experimental.pallas import tpu as pltpu


def road_head_kernel(x_ref, wt_ref, b_ref, out_ref):
    # x_ref:   [TB, C*HW]  flattened backbone features (lane-dense, no 49->128 padding)
    # wt_ref:  [8,  C*HW]  fused transposed weight (BN scale + 1/HW folded in, broadcast
    #                      over HW; cls | bb concatenated on the 8-row axis)
    # b_ref:   [1, 8]      fused bias (BN shift routed through the Linear weights)
    # out_ref: [TB, 8]
    x = jnp.maximum(x_ref[...], 0)                      # F.relu in native dtype (bf16 ok)
    # relu -> global-avg-pool -> BN -> Linear for both heads, all as one MXU contraction:
    #   out[b, j] = sum_{c,hw} relu(x)[b, c*HW+hw] * wt[j, c*HW+hw]  (f32 accumulation)
    acc = lax.dot_general(
        x, wt_ref[...],
        dimension_numbers=(((1,), (1,)), ((), ())),
        preferred_element_type=jnp.float32,
    )
    out_ref[...] = acc + b_ref[...]


def road_model_head(feat_nchw, params, *, batch_tile=128, eps=1e-5):
    """feat_nchw: [B, C, H, W] (output of the ResNet34 backbone). Returns (cls, bb)."""
    B, C, H, W = feat_nchw.shape
    HW = H * W
    CHW = C * HW
    # Free contiguous reshape; the whole C*HW extent lands on the lane axis.
    x = feat_nchw.reshape(B, CHW)

    inv_hw = jnp.float32(1.0 / float(HW))

    def fold_head(bn, w, b):
        gamma, beta, mean, var = bn
        scale = gamma / jnp.sqrt(var + eps)
        shift = beta - mean * scale
        w_f = (scale * inv_hw)[:, None] * w            # [C, n_out] (BN scale + 1/HW folded)
        b_f = shift @ w + b                            # [n_out]    (BN shift folded through)
        return w_f, b_f

    cls_wf, cls_bf = fold_head(params["cls_bn"], params["cls_w"], params["cls_b"])
    bb_wf, bb_bf = fold_head(params["bb_bn"], params["bb_w"], params["bb_b"])
    w_all = jnp.concatenate([cls_wf, bb_wf], axis=1)   # [C, 8]
    n_out = w_all.shape[1]
    n_cls = cls_wf.shape[1]

    # Broadcast the fused weight over HW, stored TRANSPOSED [n_out, C*HW] (lane-dense).
    # w_t[j, c*HW + s] = w_all[c, j] for all s, matching the row-major [B, C*HW] flatten.
    w_t = jnp.broadcast_to(w_all.T[:, :, None], (n_out, C, HW)).reshape(n_out, CHW)
    w_t = w_t.astype(feat_nchw.dtype)                  # bf16 features -> bf16 MXU operands
    b_all = jnp.concatenate([cls_bf, bb_bf], axis=0).reshape(1, n_out).astype(jnp.float32)

    itemsize = jnp.dtype(feat_nchw.dtype).itemsize

    # Batch tile selection:
    #  * <= batch_tile (amortizes ~0.35 us/step pipeline overhead),
    #  * double-buffered input <= ~24 MiB (safe on every generation's VMEM),
    #  * >= 2 grid steps when B >= 16 so the "parallel" axis shards across both v7x TCs,
    #  * multiple of 8 sublanes whenever the block does not cover the full batch.
    vmem_input_budget = 24 * 1024 * 1024
    max_tb_vmem = max(8, (vmem_input_budget // (2 * CHW * itemsize)) // 8 * 8)
    tb = min(batch_tile, B, max_tb_vmem)
    if B >= 16:
        half = ((pl.cdiv(B, 2) + 7) // 8) * 8
        tb = min(tb, half)
    if tb < B:
        tb = max(8, (tb // 8) * 8)
    grid = (pl.cdiv(B, tb),)

    flops = B * CHW + 2 * B * CHW * n_out              # relu + fused matmul
    bytes_accessed = (B * CHW * itemsize               # feature read (dominant)
                      + w_t.size * itemsize            # resident fused weight
                      + B * n_out * 4 + n_out * 4)     # output + bias
    vmem_need = 2 * tb * CHW * itemsize + w_t.size * itemsize + (4 << 20)
    vmem_limit = int(min(max(vmem_need, 16 << 20), 56 << 20))

    out = pl.pallas_call(
        road_head_kernel,
        out_shape=jax.ShapeDtypeStruct((B, n_out), jnp.float32),
        grid=grid,
        in_specs=[
            pl.BlockSpec((tb, CHW), lambda i: (i, 0)),      # batch-tiled flat features
            pl.BlockSpec((n_out, CHW), lambda i: (0, 0)),   # fused weight (resident)
            pl.BlockSpec((1, n_out), lambda i: (0, 0)),     # fused bias   (resident)
        ],
        out_specs=pl.BlockSpec((tb, n_out), lambda i: (i, 0)),
        compiler_params=pltpu.CompilerParams(
            dimension_semantics=("parallel",),
            vmem_limit_bytes=vmem_limit,
        ),
        cost_estimate=pl.CostEstimate(
            flops=flops, transcendentals=0, bytes_accessed=bytes_accessed),
    )(x, w_t, b_all)

    return out[:, :n_cls], out[:, n_cls:]


def init_params(key, C=512, n_out=4):
    """Deterministic synthetic init matching the module's parameter shapes."""
    k1, k2, k3, k4 = jax.random.split(key, 4)
    bound = 1.0 / jnp.sqrt(C)
    # BatchNorm1d(C): gamma, beta, running_mean, running_var (fresh-init values)
    bn = (jnp.ones((C,), jnp.float32), jnp.zeros((C,), jnp.float32),
          jnp.zeros((C,), jnp.float32), jnp.ones((C,), jnp.float32))
    return {
        "cls_bn": bn,
        "bb_bn": bn,
        # Linear(C, 4): PyTorch weight is [4, C]; stored transposed [C, 4] for x @ W
        "cls_w": jax.random.uniform(k1, (C, n_out), jnp.float32, -bound, bound),
        "cls_b": jax.random.uniform(k2, (n_out,), jnp.float32, -bound, bound),
        "bb_w": jax.random.uniform(k3, (C, n_out), jnp.float32, -bound, bound),
        "bb_b": jax.random.uniform(k4, (n_out,), jnp.float32, -bound, bound),
    }


def reference(feat_nchw, params, eps=1e-5):
    """Plain-JAX reference of the same forward (for sanity check)."""
    x = jnp.maximum(feat_nchw.astype(jnp.float32), 0.0)
    pooled = jnp.mean(x, axis=(2, 3))  # [B, C]

    def head(bn, w, b):
        gamma, beta, mean, var = bn
        h = (pooled - mean) / jnp.sqrt(var + eps) * gamma + beta
        return h @ w + b

    return (head(params["cls_bn"], params["cls_w"], params["cls_b"]),
            head(params["bb_bn"], params["bb_w"], params["bb_b"]))


if __name__ == "__main__":
    key = jax.random.PRNGKey(0)
    k_feat, k_params = jax.random.split(key)

    B, C, H, W = 2, 512, 4, 4  # backbone feature map shape (resnet34 -> 512 channels)
    feat = jax.random.normal(k_feat, (B, C, H, W), jnp.float32)
    params = init_params(k_params, C=C, n_out=4)

    cls_out, bb_out = road_model_head(feat, params)
    jax.block_until_ready((cls_out, bb_out))

    ref_cls, ref_bb = reference(feat, params)
    assert cls_out.shape == (B, 4) and bb_out.shape == (B, 4)
    assert jnp.allclose(cls_out, ref_cls, atol=1e-4, rtol=1e-4)
    assert jnp.allclose(bb_out, ref_bb, atol=1e-4, rtol=1e-4)

    print("KERNEL_OK")
</pallas_src>

<mosaic_0001>
module attributes {stable_mosaic.version = 11 : i64} {
  func.func @road_head_kernel(%arg0: i32, %arg1: memref<2x8192xf32, #tpu.memory_space<vmem>>, %arg2: memref<8x8192xf32, #tpu.memory_space<vmem>>, %arg3: memref<1x8xf32, #tpu.memory_space<vmem>>, %arg4: memref<2x8xf32, #tpu.memory_space<vmem>>) attributes {dimension_semantics = [#tpu.dimension_semantics<parallel>], iteration_bounds = array<i64: 1>, scalar_prefetch = 0 : i64, scratch_operands = 0 : i64, tpu.core_type = #tpu.core_type<tc>, window_params = [{transform_indices = @transform_0, window_bounds = array<i64: 2, 8192>}, {pipeline_mode = #tpu.pipeline_mode<synchronous>, transform_indices = @transform_1, window_bounds = array<i64: 8, 8192>}, {pipeline_mode = #tpu.pipeline_mode<synchronous>, transform_indices = @transform_2, window_bounds = array<i64: 1, 8>}, {transform_indices = @transform_3, window_bounds = array<i64: 2, 8>}]} {
    %c0 = arith.constant 0 : index
    %c0_0 = arith.constant 0 : index
    %0 = vector.load %arg1[%c0, %c0_0] : memref<2x8192xf32, #tpu.memory_space<vmem>>, vector<2x8192xf32>
    %cst = arith.constant 0.000000e+00 : f32
    %1 = vector.broadcast %cst : f32 to vector<2x8192xf32>
    %2 = arith.maximumf %0, %1 : vector<2x8192xf32>
    %c0_1 = arith.constant 0 : index
    %c0_2 = arith.constant 0 : index
    %3 = vector.load %arg2[%c0_1, %c0_2] : memref<8x8192xf32, #tpu.memory_space<vmem>>, vector<8x8192xf32>
    %cst_3 = arith.constant dense<0.000000e+00> : vector<2x8xf32>
    %4 = tpu.matmul %2, %3, %cst_3 {dimension_numbers = #tpu.dot_dimension_numbers<[1], [1], [0], [0], [0, 0, 1, 0], [], []>} : vector<2x8192xf32>, vector<8x8192xf32>, vector<2x8xf32> -> vector<2x8xf32>
    %c0_4 = arith.constant 0 : index
    %c0_5 = arith.constant 0 : index
    %5 = vector.load %arg3[%c0_4, %c0_5] : memref<1x8xf32, #tpu.memory_space<vmem>>, vector<1x8xf32>
    %6 = vector.broadcast %5 : vector<1x8xf32> to vector<2x8xf32>
    %7 = arith.addf %4, %6 : vector<2x8xf32>
    %c0_6 = arith.constant 0 : index
    %c0_7 = arith.constant 0 : index
    %8 = vector.load %arg4[%c0_6, %c0_7] : memref<2x8xf32, #tpu.memory_space<vmem>>, vector<2x8xf32>
    tpu.vector_store %arg4[%c0_6, %c0_7], %7 {strides = array<i32>} : memref<2x8xf32, #tpu.memory_space<vmem>>, vector<2x8xf32>,
    return
  }
  func.func @transform_0(%arg0: i32) -> (i32, i32) {
    %c0_i32 = arith.constant 0 : i32
    %c0_i32_0 = arith.constant 0 : i32
    return %arg0, %c0_i32 : i32, i32
  }
  func.func @transform_1(%arg0: i32) -> (i32, i32) {
    %c0_i32 = arith.constant 0 : i32
    %c0_i32_0 = arith.constant 0 : i32
    %c0_i32_1 = arith.constant 0 : i32
    return %c0_i32, %c0_i32_0 : i32, i32
  }
  func.func @transform_2(%arg0: i32) -> (i32, i32) {
    %c0_i32 = arith.constant 0 : i32
    %c0_i32_0 = arith.constant 0 : i32
    %c0_i32_1 = arith.constant 0 : i32
    return %c0_i32, %c0_i32_0 : i32, i32
  }
  func.func @transform_3(%arg0: i32) -> (i32, i32) {
    %c0_i32 = arith.constant 0 : i32
    %c0_i32_0 = arith.constant 0 : i32
    return %arg0, %c0_i32 : i32, i32
  }
}

</mosaic_0001>

<bundles_post_ra>
// kernel: tpu_custom_call.1
= control target key start
LH: loop header
LB: loop body
LE: loop exit
PB: predicated region body
PF: predicated region fallthrough
CT: control target
= control target key end

     0   :  { %8 = vsyncpa [#allocation3], 0  ;;  %s2988_s0 = inlined_call_operand.hbm [shape: f32[2,8192], index: 0, kind: input, shape index: {}]   ;;  %s2989_s1 = inlined_call_operand.hbm [shape: f32[8,8192], index: 1, kind: input, shape index: {}]   ;;  %s2990_s2 = inlined_call_operand.vmem [shape: f32[1,8], index: 2, kind: input, shape index: {}]   ;;  %s2991_s3 = inlined_call_operand.hbm [shape: f32[2,8], index: 3, kind: output, shape index: {}]  }
   0x1   :  { %9 = vsyncpa [#allocation6], 0 }
   0x2   :  { %10 = vsyncpa [#allocation4], 0  ;;  %s2891_s12 = smov [#allocation2]   ;;  %s2892_s14 = smov [#allocation5]  }
   0x3   :  { %s17_s13 = sshll.u32 %s2891_s12, 4  ;;  %s27_s15 = sshll.u32 %s2892_s14, 4  ;;  %s18_s13 = int_to_ptr.vmem [resolvable:$true] %s17_s13  ;;  %s28_s15 = int_to_ptr.vmem [resolvable:$true] %s27_s15 }
   0x4   :  { %s2819_s18 = scalar_lea.hbm %s2988_s0, 2048 }
   0x5   :  { %p2820_p0 = scmp.ne.s32.totalorder %s2988_s0, %s2819_s18  ;;  %p2823_p1 = scmp.lt.u32.totalorder %s2819_s18, %s2988_s0 }
   0x7   :  { %p2825_p2 = pnand %p2823_p1, %p2820_p0 }
   0x9   :  { %2828 = shalt.err (!%p2825_p2)
}
   0xa   :  { %s2829_s23 = scalar_lea.vmem %s18_s13, 2048  ;;  %p2834_p4 = scmp.lt.s32.totalorder %s18_s13, %s18_s13 }
   0xb   :  { %p2830_p3 = scmp.ne.s32.totalorder %s18_s13, %s2829_s23  ;;  %p2835_p5 = scmp.lt.s32.totalorder %s2829_s23, %s2829_s23 }
   0xd   :  { %p2836_p6 = por %p2835_p5, %p2834_p4 }
   0xf   :  { %p2837_p7 = pnand %p2836_p6, %p2830_p3 }
  0x11   :  { %2840 = shalt.err (!%p2837_p7)
}
  0x12   :  { %20 = dma.hbm_to_vmem [thread:$0]  %s2988_s0, 2048, %s18_s13, [#allocation3]  }
  0x13   :  { %s2841_s28 = scalar_lea.hbm %s2989_s1, 8192 }
  0x14   :  { %p2842_p8 = scmp.ne.s32.totalorder %s2989_s1, %s2841_s28  ;;  %p2845_p9 = scmp.lt.u32.totalorder %s2841_s28, %s2989_s1 }
  0x16   :  { %p2847_p10 = pnand %p2845_p9, %p2842_p8 }
  0x18   :  { %2850 = shalt.err (!%p2847_p10)
}
  0x19   :  { %s2851_s6 = scalar_lea.vmem %s28_s15, 8192  ;;  %p2856_p12 = scmp.lt.s32.totalorder %s28_s15, %s28_s15 }
  0x1a   :  { %p2852_p11 = scmp.ne.s32.totalorder %s28_s15, %s2851_s6  ;;  %p2857_p13 = scmp.lt.s32.totalorder %s2851_s6, %s2851_s6 }
  0x1c   :  { %p2858_p0 = por %p2857_p13, %p2856_p12 }
  0x1e   :  { %p2859_p1 = pnand %p2858_p0, %p2852_p11 }
  0x20   :  { %2862 = shalt.err (!%p2859_p1)
}
  0x21   :  { %30 = dma.hbm_to_vmem [thread:$0]  %s2989_s1, 8192, %s28_s15, [#allocation6]  }
  0x22   :  { %2885 = dma.done.wait [#allocation3], 2048  }
  0x23   :  { %2886 = vsyncadd [#allocation3], 4294965248 }
  0x24   :  { %2887 = dma.done.wait [#allocation6], 8192  }
  0x25   :  { %2888 = vsyncadd [#allocation6], 4294959104  ;;  %v162_v0 = vlaneseq  ;;  %v2893_v1 = vmov 1983009808   ;;  %v72_v5 = vld [vmem:[#allocation5 + $0x8] sm:$0xff]  ;;  %v71_v6 = vld [vmem:[#allocation5] sm:$0xff] }
  0x26   :  { %v160_v2 = vunpack.c.l.s4 %v2893_v1  ;;  %v104_v7 = vld [vmem:[#allocation5 + $0x108] sm:$0xff]  ;;  %494 = vmatprep.subr.mxu1 %v72_v5  ;;  %v103_v9 = vld [vmem:[#allocation5 + $0x100] sm:$0xff]  ;;  %v74_v11 = vld [vmem:[#allocation5 + $0x18] sm:$0xff]  ;;  %s2894_s9 = smov [#allocation7]   ;;  %vm2734_vm0 = vcmask 58368  }
  0x27   :  { %v163_v4 = vshrl.u32 %v162_v0, 7  ;;  %1614 = vmatprep.subr.mxu0 %v104_v7  ;;  %v39_v10 = vld [vmem:[#allocation2] sm:$0xff]  ;;  %495 = vmatpush1.xpose.msra.mxu1 %v71_v6  ;;  %v106_v14 = vld [vmem:[#allocation5 + $0x118] sm:$0xff]  ;;  %v40_v18 = vld [vmem:[#allocation2 + $0x8] sm:$0xff]  ;;  %s2742_s10 = sshll.u32 %s2894_s9, 4  ;;  %s2743_s10 = int_to_ptr.vmem [resolvable:$true] %s2742_s10 }
  0x28   :  { %v161_v3 = vunpack.c.0.s8 %v160_v2  ;;  %1615 = vmatpush1.xpose.msra.mxu0 %v103_v9  ;;  %v55_v12 = vmax.f32 %v39_v10, 0.0  ;;  %v47_v13 = vld [vmem:[#allocation2 + $0x40] sm:$0xff]  ;;  %564 = vmatprep.subr.mxu1 %v74_v11  ;;  %v48_v21 = vld [vmem:[#allocation2 + $0x48] sm:$0xff]  ;;  %v73_v25 = vld [vmem:[#allocation5 + $0x10] sm:$0xff]  ;;  %v56_v27 = vmax.f32 %v40_v18, 0.0  ;;  %s2863_s11 = scalar_lea.vmem %s2743_s10, 32  ;;  %p2868_p3 = scmp.lt.s32.totalorder %s2743_s10, %s2743_s10 }
  0x29   :  { %v63_v15 = vmax.f32 %v47_v13, 0.0  ;;  %1684 = vmatprep.subr.mxu0 %v106_v14  ;;  %v105_v28 = vld [vmem:[#allocation5 + $0x110] sm:$0xff]  ;;  %v64_v30 = vmax.f32 %v48_v21, 0.0  ;;  %v76_v31 = vld [vmem:[#allocation5 + $0x28] sm:$0xff]  ;;  %v75_v36 = vld [vmem:[#allocation5 + $0x20] sm:$0xff]  ;;  %p2864_p2 = scmp.ne.s32.totalorder %s2743_s10, %s2863_s11  ;;  %p2869_p4 = scmp.lt.s32.totalorder %s2863_s11, %s2863_s11 }
  0x2a   :  { %v2939_v8 = vsub.s32 %v161_v3, %v163_v4  ;;  %v158_v16 = vcombine.high %v55_v12, %v55_v12  ;;  %v108_v33 = vld [vmem:[#allocation5 + $0x128] sm:$0xff]  ;;  %v175_v38 = vcombine.high %v56_v27, %v56_v27  ;;  %v107_v39 = vld [vmem:[#allocation5 + $0x120] sm:$0xff]  ;;  %v78_v42 = vld [vmem:[#allocation5 + $0x38] sm:$0xff] }
  0x2b   :  { %v294_v19 = vcombine.high %v63_v15, %v63_v15  ;;  %v311_v41 = vcombine.high %v64_v30, %v64_v30  ;;  %v110_v43 = vld [vmem:[#allocation5 + $0x138] sm:$0xff]  ;;  %v41_v46 = vld [vmem:[#allocation2 + $0x10] sm:$0xff]  ;;  %v80_v54 = vld [vmem:[#allocation5 + $0x48] sm:$0xff]  ;;  %p2870_p5 = por %p2869_p4, %p2868_p3 }
  0x2c   :  { %v165_v17 = vrot.slane %v55_v12, %v2939_v8  ;;  %v301_v20 = vrot.slane %v63_v15, %v2939_v8  ;;  %v172_v23 = vrot.slane %v158_v16, %v2939_v8  ;;  %v182_v34 = vrot.slane %v56_v27, %v2939_v8  ;;  %v49_v47 = vld [vmem:[#allocation2 + $0x50] sm:$0xff]  ;;  %v112_v55 = vld [vmem:[#allocation5 + $0x148] sm:$0xff]  ;;  %v79_v58 = vld [vmem:[#allocation5 + $0x40] sm:$0xff] }
  0x2d   :  { %v308_v26 = vrot.slane %v294_v19, %v2939_v8  ;;  %v318_v35 = vrot.slane %v64_v30, %v2939_v8  ;;  %v189_v44 = vrot.slane %v175_v38, %v2939_v8  ;;  %v325_v45 = vrot.slane %v311_v41, %v2939_v8  ;;  %v77_v48 = vld [vmem:[#allocation5 + $0x30] sm:$0xff]  ;;  %v111_v61 = vld [vmem:[#allocation5 + $0x140] sm:$0xff]  ;;  %v82_v0 = vld [vmem:[#allocation5 + $0x58] sm:$0xff]  ;;  %p2871_p6 = pnand %p2870_p5, %p2864_p2 }
  0x2e   :  { %v173_v22 = vcombine.high %v165_v17, %v165_v17  ;;  %v309_v24 = vcombine.high %v301_v20, %v301_v20  ;;  %v174_v29 = vcombine.high %v172_v23, %v172_v23  ;;  %v190_v37 = vcombine.high %v182_v34, %v182_v34  ;;  %v109_v51 = vld [vmem:[#allocation5 + $0x130] sm:$0xff]  ;;  %v114_v1 = vld [vmem:[#allocation5 + $0x158] sm:$0xff]  ;;  %v84_v13 = vld [vmem:[#allocation5 + $0x68] sm:$0xff] }
  0x2f   :  { %v310_v32 = vcombine.high %v308_v26, %v308_v26  ;;  %v326_v40 = vcombine.high %v318_v35, %v318_v35  ;;  %v191_v49 = vcombine.high %v189_v44, %v189_v44  ;;  %v57_v50 = vmax.f32 %v41_v46, 0.0  ;;  %v42_v4 = vld [vmem:[#allocation2 + $0x18] sm:$0xff]  ;;  %v81_v6 = vld [vmem:[#allocation5 + $0x50] sm:$0xff]  ;;  %v116_v14 = vld [vmem:[#allocation5 + $0x168] sm:$0xff] }
  0x30   :  { %558 = vmatprep.mubr.f32.mxu1 %v173_v22  ;;  %1678 = vmatprep.mubr.f32.mxu0 %v309_v24  ;;  %v327_v52 = vcombine.high %v325_v45, %v325_v45  ;;  %v65_v53 = vmax.f32 %v49_v47, 0.0  ;;  %v50_v5 = vld [vmem:[#allocation2 + $0x58] sm:$0xff]  ;;  %v58_v9 = vmax.f32 %v42_v4, 0.0  ;;  %v113_v10 = vld [vmem:[#allocation5 + $0x150] sm:$0xff]  ;;  %v43_v27 = vld [vmem:[#allocation2 + $0x20] sm:$0xff] }
  0x31   :  { %559 = vmatmul.mubr.f32.vlgmr.msra.gmra.mrb[0].mxu1 %v165_v17  ;;  %1679 = vmatmul.mubr.f32.vlgmr.msra.gmra.mrb[0].mxu0 %v301_v20  ;;  %v199_v56 = vrot.slane %v57_v50, %v2939_v8  ;;  %v192_v60 = vcombine.high %v57_v50, %v57_v50  ;;  %v66_v12 = vmax.f32 %v50_v5, 0.0  ;;  %v83_v17 = vld [vmem:[#allocation5 + $0x60] sm:$0xff]  ;;  %v118_v24 = vld [vmem:[#allocation5 + $0x178] sm:$0xff]  ;;  %v52_v50 = vld [vmem:[#allocation2 + $0x68] sm:$0xff] }
  0x32   :  { %565 = vmatpush1.xpose.msra.mxu1 %v73_v25  ;;  %1685 = vmatpush1.xpose.msra.mxu0 %v105_v28  ;;  %v335_v57 = vrot.slane %v65_v53, %v2939_v8  ;;  %v328_v63 = vcombine.high %v65_v53, %v65_v53  ;;  %v216_v15 = vrot.slane %v58_v9, %v2939_v8  ;;  %v115_v20 = vld [vmem:[#allocation5 + $0x160] sm:$0xff]  ;;  %v122_v46 = vld [vmem:[#allocation5 + $0x198] sm:$0xff] }
  0x33   :  { %628 = vmatprep.mubr.f32.mxu1 %v174_v29  ;;  %634 = vmatprep.subr.mxu1 %v76_v31  ;;  %v207_v59 = vcombine.high %v199_v56, %v199_v56  ;;  %v206_v2 = vrot.slane %v192_v60, %v2939_v8  ;;  %v352_v16 = vrot.slane %v66_v12, %v2939_v8  ;;  %v51_v28 = vld [vmem:[#allocation2 + $0x60] sm:$0xff]  ;;  %v85_v29 = vld [vmem:[#allocation5 + $0x70] sm:$0xff]  ;;  %v59_v31 = vmax.f32 %v43_v27, 0.0  ;;  %v126_v4 = vld [vmem:[#allocation5 + $0x1b8] sm:$0xff] }
  0x34   :  { %1748 = vmatprep.mubr.f32.mxu0 %v310_v32  ;;  %1754 = vmatprep.subr.mxu0 %v108_v33  ;;  %v343_v62 = vcombine.high %v335_v57, %v335_v57  ;;  %v342_v3 = vrot.slane %v328_v63, %v2939_v8  ;;  %v224_v18 = vcombine.high %v216_v15, %v216_v15  ;;  %v117_v32 = vld [vmem:[#allocation5 + $0x170] sm:$0xff]  ;;  %v130_v27 = vld [vmem:[#allocation5 + $0x1d8] sm:$0xff] }
  0x35   :  { %v208_v7 = vcombine.high %v206_v2, %v206_v2  ;;  %v209_v19 = vcombine.high %v58_v9, %v58_v9  ;;  %v360_v21 = vcombine.high %v352_v16, %v352_v16  ;;  %v345_v22 = vcombine.high %v66_v12, %v66_v12  ;;  %v53_v9 = vld [vmem:[#allocation2 + $0x70] sm:$0xff] }
  0x36   :  { %v344_v11 = vcombine.high %v342_v3, %v342_v3  ;;  %v226_v41 = vcombine.high %v59_v31, %v59_v31 }
  0x37   :  { %v223_v25 = vrot.slane %v209_v19, %v2939_v8 }
  0x38   :  { %v240_v47 = vrot.slane %v226_v41, %v2939_v8 }
  0x39   :  { %629 = vmatmul.mubr.f32.vlgmr.msra.gmra.mrb[0].mxu1 %v172_v23  ;;  %1749 = vmatmul.mubr.f32.vlgmr.msra.gmra.mrb[0].mxu0 %v308_v26  ;;  %v86_v23 = vld [vmem:[#allocation5 + $0x78] sm:$0xff]  ;;  %v359_v26 = vrot.slane %v345_v22, %v2939_v8  ;;  %v225_v30 = vcombine.high %v223_v25, %v223_v25 }
  0x3a   :  { %635 = vmatpush1.xpose.msra.mxu1 %v75_v36  ;;  %1755 = vmatpush1.xpose.msra.mxu0 %v107_v39  ;;  %v120_v36 = vld [vmem:[#allocation5 + $0x188] sm:$0xff]  ;;  %v87_v39 = vld [vmem:[#allocation5 + $0x80] sm:$0xff] }
  0x3b   :  { %698 = vmatprep.mubr.f32.mxu1 %v190_v37  ;;  %704 = vmatprep.subr.mxu1 %v78_v42  ;;  %v361_v33 = vcombine.high %v359_v26, %v359_v26  ;;  %v233_v37 = vrot.slane %v59_v31, %v2939_v8  ;;  %v119_v42 = vld [vmem:[#allocation5 + $0x180] sm:$0xff]  ;;  %v54_v31 = vld [vmem:[#allocation2 + $0x78] sm:$0xff] }
  0x3c   :  { %1818 = vmatprep.mubr.f32.mxu0 %v326_v40  ;;  %1824 = vmatprep.subr.mxu0 %v110_v43 }
  0x3d   :  { %v241_v40 = vcombine.high %v233_v37, %v233_v37 }
  0x41   :  { %699 = vmatmul.mubr.f32.vlgmr.msra.gmra.mrb[0].mxu1 %v182_v34  ;;  %1819 = vmatmul.mubr.f32.vlgmr.msra.gmra.mrb[0].mxu0 %v318_v35  ;;  %v67_v34 = vmax.f32 %v51_v28, 0.0  ;;  %v88_v35 = vld [vmem:[#allocation5 + $0x88] sm:$0xff] }
  0x42   :  { %705 = vmatpush1.xpose.msra.mxu1 %v77_v48  ;;  %1825 = vmatpush1.xpose.msra.mxu0 %v109_v51  ;;  %v89_v51 = vld [vmem:[#allocation5 + $0x90] sm:$0xff] }
  0x43   :  { %768 = vmatprep.mubr.f32.mxu1 %v191_v49  ;;  %774 = vmatprep.subr.mxu1 %v80_v54  ;;  %v369_v38 = vrot.slane %v67_v34, %v2939_v8  ;;  %v44_v49 = vld [vmem:[#allocation2 + $0x28] sm:$0xff]  ;;  %v121_v54 = vld [vmem:[#allocation5 + $0x190] sm:$0xff] }
  0x44   :  { %1888 = vmatprep.mubr.f32.mxu0 %v327_v52  ;;  %1894 = vmatprep.subr.mxu0 %v112_v55  ;;  %v242_v52 = vcombine.high %v240_v47, %v240_v47  ;;  %v60_v53 = vmax.f32 %v44_v49, 0.0  ;;  %v134_v49 = vld [vmem:[#allocation5 + $0x1f8] sm:$0xff] }
  0x45   :  { %v377_v43 = vcombine.high %v369_v38, %v369_v38 }
  0x46   :  { %v243_v63 = vcombine.high %v60_v53, %v60_v53 }
  0x48   :  { %v257_v5 = vrot.slane %v243_v63, %v2939_v8 }
  0x49   :  { %769 = vmatmul.mubr.f32.vlgmr.msra.gmra.mrb[0].mxu1 %v189_v44  ;;  %1889 = vmatmul.mubr.f32.vlgmr.msra.gmra.mrb[0].mxu0 %v325_v45  ;;  %v362_v44 = vcombine.high %v67_v34, %v67_v34  ;;  %v90_v45 = vld [vmem:[#allocation5 + $0x98] sm:$0xff] }
  0x4a   :  { %775 = vmatpush1.xpose.msra.mxu1 %v79_v58  ;;  %1895 = vmatpush1.xpose.msra.mxu0 %v111_v61  ;;  %v124_v58 = vld [vmem:[#allocation5 + $0x1a8] sm:$0xff]  ;;  %v91_v61 = vld [vmem:[#allocation5 + $0xa0] sm:$0xff] }
  0x4b   :  { %838 = vmatprep.mubr.f32.mxu1 %v207_v59  ;;  %844 = vmatprep.subr.mxu1 %v82_v0  ;;  %v376_v48 = vrot.slane %v362_v44, %v2939_v8  ;;  %v250_v59 = vrot.slane %v60_v53, %v2939_v8  ;;  %v123_v0 = vld [vmem:[#allocation5 + $0x1a0] sm:$0xff] }
  0x4c   :  { %1958 = vmatprep.mubr.f32.mxu0 %v343_v62  ;;  %1964 = vmatprep.subr.mxu0 %v114_v1 }
  0x4d   :  { %v378_v55 = vcombine.high %v376_v48, %v376_v48  ;;  %v258_v62 = vcombine.high %v250_v59, %v250_v59 }
  0x51   :  { %839 = vmatmul.mubr.f32.vlgmr.msra.gmra.mrb[0].mxu1 %v199_v56  ;;  %1959 = vmatmul.mubr.f32.vlgmr.msra.gmra.mrb[0].mxu0 %v335_v57  ;;  %v68_v56 = vmax.f32 %v52_v50, 0.0  ;;  %v92_v57 = vld [vmem:[#allocation5 + $0xa8] sm:$0xff] }
  0x52   :  { %845 = vmatpush1.xpose.msra.mxu1 %v81_v6  ;;  %1965 = vmatpush1.xpose.msra.mxu0 %v113_v10  ;;  %v93_v10 = vld [vmem:[#allocation5 + $0xb0] sm:$0xff] }
  0x53   :  { %908 = vmatprep.mubr.f32.mxu1 %v208_v7  ;;  %914 = vmatprep.subr.mxu1 %v84_v13  ;;  %v386_v60 = vrot.slane %v68_v56, %v2939_v8  ;;  %v45_v7 = vld [vmem:[#allocation2 + $0x30] sm:$0xff] }
  0x54   :  { %2028 = vmatprep.mubr.f32.mxu0 %v344_v11  ;;  %2034 = vmatprep.subr.mxu0 %v116_v14  ;;  %v259_v11 = vcombine.high %v257_v5, %v257_v5  ;;  %v61_v12 = vmax.f32 %v45_v7, 0.0  ;;  %v125_v13 = vld [vmem:[#allocation5 + $0x1b0] sm:$0xff] }
  0x55   :  { %v394_v1 = vcombine.high %v386_v60, %v386_v60 }
  0x56   :  { %v260_v22 = vcombine.high %v61_v12, %v61_v12 }
  0x58   :  { %v274_v28 = vrot.slane %v260_v22, %v2939_v8 }
  0x59   :  { %909 = vmatmul.mubr.f32.vlgmr.msra.gmra.mrb[0].mxu1 %v206_v2  ;;  %2029 = vmatmul.mubr.f32.vlgmr.msra.gmra.mrb[0].mxu0 %v342_v3  ;;  %v379_v2 = vcombine.high %v68_v56, %v68_v56  ;;  %v94_v3 = vld [vmem:[#allocation5 + $0xb8] sm:$0xff]  ;;  %v2752_v56 = vld [vmem:[%s2990_s2] ss:$0 sm:$0xff] }
  0x5a   :  { %915 = vmatpush1.xpose.msra.mxu1 %v83_v17  ;;  %2035 = vmatpush1.xpose.msra.mxu0 %v115_v20  ;;  %v128_v17 = vld [vmem:[#allocation5 + $0x1c8] sm:$0xff]  ;;  %v95_v20 = vld [vmem:[#allocation5 + $0xc0] sm:$0xff] }
  0x5b   :  { %978 = vmatprep.mubr.f32.mxu1 %v224_v18  ;;  %984 = vmatprep.subr.mxu1 %v86_v23  ;;  %v393_v6 = vrot.slane %v379_v2, %v2939_v8  ;;  %v267_v18 = vrot.slane %v61_v12, %v2939_v8  ;;  %v127_v23 = vld [vmem:[#allocation5 + $0x1c0] sm:$0xff] }
  0x5c   :  { %2098 = vmatprep.mubr.f32.mxu0 %v360_v21  ;;  %2104 = vmatprep.subr.mxu0 %v118_v24 }
  0x5d   :  { %v395_v14 = vcombine.high %v393_v6, %v393_v6  ;;  %v275_v21 = vcombine.high %v267_v18, %v267_v18 }
  0x61   :  { %979 = vmatmul.mubr.f32.vlgmr.msra.gmra.mrb[0].mxu1 %v216_v15  ;;  %2099 = vmatmul.mubr.f32.vlgmr.msra.gmra.mrb[0].mxu0 %v352_v16  ;;  %v69_v15 = vmax.f32 %v53_v9, 0.0  ;;  %v96_v16 = vld [vmem:[#allocation5 + $0xc8] sm:$0xff] }
  0x62   :  { %985 = vmatpush1.xpose.msra.mxu1 %v85_v29  ;;  %2105 = vmatpush1.xpose.msra.mxu0 %v117_v32  ;;  %v97_v32 = vld [vmem:[#allocation5 + $0xd0] sm:$0xff] }
  0x63   :  { %1048 = vmatprep.mubr.f32.mxu1 %v225_v30  ;;  %1054 = vmatprep.subr.mxu1 %v88_v35  ;;  %v403_v19 = vrot.slane %v69_v15, %v2939_v8  ;;  %v46_v30 = vld [vmem:[#allocation2 + $0x38] sm:$0xff]  ;;  %v129_v35 = vld [vmem:[#allocation5 + $0x1d0] sm:$0xff] }
  0x64   :  { %2168 = vmatprep.mubr.f32.mxu0 %v361_v33  ;;  %2174 = vmatprep.subr.mxu0 %v120_v36  ;;  %v276_v33 = vcombine.high %v274_v28, %v274_v28  ;;  %v62_v34 = vmax.f32 %v46_v30, 0.0 }
  0x65   :  { %v411_v24 = vcombine.high %v403_v19, %v403_v19 }
  0x66   :  { %v277_v44 = vcombine.high %v62_v34, %v62_v34 }
  0x68   :  { %v291_v50 = vrot.slane %v277_v44, %v2939_v8 }
  0x69   :  { %1049 = vmatmul.mubr.f32.vlgmr.msra.gmra.mrb[0].mxu1 %v223_v25  ;;  %2169 = vmatmul.mubr.f32.vlgmr.msra.gmra.mrb[0].mxu0 %v359_v26  ;;  %v396_v25 = vcombine.high %v69_v15, %v69_v15  ;;  %v98_v26 = vld [vmem:[#allocation5 + $0xd8] sm:$0xff] }
  0x6a   :  { %1055 = vmatpush1.xpose.msra.mxu1 %v87_v39  ;;  %2175 = vmatpush1.xpose.msra.mxu0 %v119_v42  ;;  %v132_v39 = vld [vmem:[#allocation5 + $0x1e8] sm:$0xff]  ;;  %v99_v42 = vld [vmem:[#allocation5 + $0xe0] sm:$0xff]  ;;  %v293_v53 = vcombine.high %v291_v50, %v291_v50 }
  0x6b   :  { %1118 = vmatprep.mubr.f32.mxu1 %v241_v40  ;;  %1124 = vmatprep.subr.mxu1 %v90_v45  ;;  %v410_v29 = vrot.slane %v396_v25, %v2939_v8  ;;  %v284_v40 = vrot.slane %v62_v34, %v2939_v8  ;;  %v131_v45 = vld [vmem:[#allocation5 + $0x1e0] sm:$0xff] }
  0x6c   :  { %2238 = vmatprep.mubr.f32.mxu0 %v377_v43  ;;  %2244 = vmatprep.subr.mxu0 %v122_v46 }
  0x6d   :  { %v412_v36 = vcombine.high %v410_v29, %v410_v29  ;;  %v292_v43 = vcombine.high %v284_v40, %v284_v40 }
  0x71   :  { %1119 = vmatmul.mubr.f32.vlgmr.msra.gmra.mrb[0].mxu1 %v233_v37  ;;  %2239 = vmatmul.mubr.f32.vlgmr.msra.gmra.mrb[0].mxu0 %v369_v38  ;;  %v70_v37 = vmax.f32 %v54_v31, 0.0  ;;  %v100_v38 = vld [vmem:[#allocation5 + $0xe8] sm:$0xff] }
  0x72   :  { %1125 = vmatpush1.xpose.msra.mxu1 %v89_v51  ;;  %2245 = vmatpush1.xpose.msra.mxu0 %v121_v54  ;;  %v133_v54 = vld [vmem:[#allocation5 + $0x1f0] sm:$0xff] }
  0x73   :  { %1188 = vmatprep.mubr.f32.mxu1 %v242_v52  ;;  %1194 = vmatprep.subr.mxu1 %v92_v57  ;;  %v420_v41 = vrot.slane %v70_v37, %v2939_v8  ;;  %v101_v52 = vld [vmem:[#allocation5 + $0xf0] sm:$0xff] }
  0x74   :  { %2308 = vmatprep.mubr.f32.mxu0 %v378_v55  ;;  %2314 = vmatprep.subr.mxu0 %v124_v58 }
  0x75   :  { %v428_v46 = vcombine.high %v420_v41, %v420_v41 }
  0x79   :  { %1189 = vmatmul.mubr.f32.vlgmr.msra.gmra.mrb[0].mxu1 %v240_v47  ;;  %2309 = vmatmul.mubr.f32.vlgmr.msra.gmra.mrb[0].mxu0 %v376_v48  ;;  %v413_v47 = vcombine.high %v70_v37, %v70_v37  ;;  %v102_v48 = vld [vmem:[#allocation5 + $0xf8] sm:$0xff] }
  0x7a   :  { %1195 = vmatpush1.xpose.msra.mxu1 %v91_v61  ;;  %2315 = vmatpush1.xpose.msra.mxu0 %v123_v0 }
  0x7b   :  { %1258 = vmatprep.mubr.f32.mxu1 %v258_v62  ;;  %1264 = vmatprep.subr.mxu1 %v94_v3  ;;  %v427_v51 = vrot.slane %v413_v47, %v2939_v8 }
  0x7c   :  { %2378 = vmatprep.mubr.f32.mxu0 %v394_v1  ;;  %2384 = vmatprep.subr.mxu0 %v126_v4 }
  0x7d   :  { %v429_v55 = vcombine.high %v427_v51, %v427_v51 }
  0x81   :  { %1259 = vmatmul.mubr.f32.vlgmr.msra.gmra.mrb[0].mxu1 %v250_v59  ;;  %2379 = vmatmul.mubr.f32.vlgmr.msra.gmra.mrb[0].mxu0 %v386_v60 }
  0x82   :  { %1265 = vmatpush1.xpose.msra.mxu1 %v93_v10  ;;  %2385 = vmatpush1.xpose.msra.mxu0 %v125_v13 }
  0x83   :  { %1328 = vmatprep.mubr.f32.mxu1 %v259_v11  ;;  %1334 = vmatprep.subr.mxu1 %v96_v16 }
  0x84   :  { %2448 = vmatprep.mubr.f32.mxu0 %v395_v14  ;;  %2454 = vmatprep.subr.mxu0 %v128_v17 }
  0x89   :  { %1329 = vmatmul.mubr.f32.vlgmr.msra.gmra.mrb[0].mxu1 %v257_v5  ;;  %2449 = vmatmul.mubr.f32.vlgmr.msra.gmra.mrb[0].mxu0 %v393_v6 }
  0x8a   :  { %1335 = vmatpush1.xpose.msra.mxu1 %v95_v20  ;;  %2455 = vmatpush1.xpose.msra.mxu0 %v127_v23 }
  0x8b   :  { %1398 = vmatprep.mubr.f32.mxu1 %v275_v21  ;;  %1404 = vmatprep.subr.mxu1 %v98_v26 }
  0x8c   :  { %2518 = vmatprep.mubr.f32.mxu0 %v411_v24  ;;  %2524 = vmatprep.subr.mxu0 %v130_v27 }
  0x91   :  { %1399 = vmatmul.mubr.f32.vlgmr.msra.gmra.mrb[0].mxu1 %v267_v18  ;;  %2519 = vmatmul.mubr.f32.vlgmr.msra.gmra.mrb[0].mxu0 %v403_v19 }
  0x92   :  { %1405 = vmatpush1.xpose.msra.mxu1 %v97_v32  ;;  %2525 = vmatpush1.xpose.msra.mxu0 %v129_v35 }
  0x93   :  { %1468 = vmatprep.mubr.f32.mxu1 %v276_v33  ;;  %1474 = vmatprep.subr.mxu1 %v100_v38 }
  0x94   :  { %2588 = vmatprep.mubr.f32.mxu0 %v412_v36  ;;  %2594 = vmatprep.subr.mxu0 %v132_v39 }
  0x99   :  { %1469 = vmatmul.mubr.f32.vlgmr.msra.gmra.mrb[0].mxu1 %v274_v28  ;;  %2589 = vmatmul.mubr.f32.vlgmr.msra.gmra.mrb[0].mxu0 %v410_v29 }
  0x9a   :  { %1475 = vmatpush1.xpose.msra.mxu1 %v99_v42  ;;  %2595 = vmatpush1.xpose.msra.mxu0 %v131_v45 }
  0x9b   :  { %1538 = vmatprep.mubr.f32.mxu1 %v292_v43  ;;  %1544 = vmatprep.subr.mxu1 %v102_v48 }
  0x9c   :  { %2658 = vmatprep.mubr.f32.mxu0 %v428_v46  ;;  %2664 = vmatprep.subr.mxu0 %v134_v49 }
  0xa1   :  { %1539 = vmatmul.mubr.f32.vlgmr.msra.gmra.mrb[0].mxu1 %v284_v40  ;;  %2659 = vmatmul.mubr.f32.vlgmr.msra.gmra.mrb[0].mxu0 %v420_v41 }
  0xa2   :  { %1545 = vmatpush1.xpose.msra.mxu1 %v101_v52  ;;  %2665 = vmatpush1.xpose.msra.mxu0 %v133_v54 }
  0xa3   :  { %1608 = vmatprep.mubr.f32.mxu1 %v293_v53  ;;  %2728 = vmatprep.mubr.f32.mxu0 %v429_v55 }
  0xa9   :  { %1609 = vmatmul.mubr.f32.vlgmr.msra.gmra.mrb[0].mxu1 %v291_v50  ;;  %2729 = vmatmul.mubr.f32.vlgmr.msra.gmra.mrb[0].mxu0 %v427_v51 }
 0x17c   :  { %v1610_v57 = vpop.f32.mrb[0].mxu1  ;;  %v2730_v58 = vpop.f32.mrb[0].mxu0 }
 0x17d   :  { %v2753_v8 = vadd.f32 %v2752_v56, %v1610_v57  ;;  %v1612_v59 = vpop.f32.mrb[1].mxu1  ;;  %v2732_v60 = vpop.f32.mrb[1].mxu0 }
 0x17f   :  { %v2754_v61 = vadd.f32 %v2753_v8, %v2730_v58 }
 0x181   :  { %2735 = vst.msk [vmem:[#allocation7] sm:$0x3] %vm2734_vm0, %v2754_v61 }
 0x182   :  { %2874 = shalt.err (!%p2871_p6)
}
 0x183   :  { %s2875_s13 = scalar_lea.hbm %s2991_s3, 32 }
 0x184   :  { %p2876_p7 = scmp.ne.s32.totalorder %s2991_s3, %s2875_s13  ;;  %p2879_p8 = scmp.lt.u32.totalorder %s2875_s13, %s2991_s3 }
 0x186   :  { %p2881_p9 = pnand %p2879_p8, %p2876_p7 }
 0x188   :  { %2884 = shalt.err (!%p2881_p9)
}
 0x189   :  { %2745 = dma.vmem_to_hbm [thread:$0]  %s2743_s10, 32, %s2991_s3, [#allocation4]  }
 0x18a   :  { %2889 = dma.done.wait [#allocation4], 32  }
 0x18b   :  { %2890 = vsyncadd [#allocation4], 4294967264 }
 0x18c   :  { %2749 = vsyncpa [#allocation3], 1 }
 0x18d   :  { %2750 = vsyncpa [#allocation6], 1 }
 0x18e   :  { %2751 = vsyncpa [#allocation4], 1 }

</bundles_post_ra>
